<compile_context>
chip_gen: v7x
topology: tpu7x:2x2x1
jax: 0.10.0
libtpu: 0.0.40
codegen_flags: <defaults>
</compile_context>

<pallas_src>
import functools
import math

import jax
import jax.numpy as jnp
import numpy as np
from jax import lax
from jax.experimental import pallas as pl
from jax.experimental.pallas import tpu as pltpu

_THRESHOLDS = ((0.0, 20.0), (20.0, 40.0), (40.0, 55.0),
               (55.0, 65.0), (65.0, 75.0), (75.0, float("inf")))
_WEIGHTS = (1.0, 100.0, 100.0, 100.0, 100.0, 100.0)
_UPPER_EDGES = (20.0, 40.0, 55.0, 65.0, 75.0)   # bin index == # edges strictly exceeded
_LANES = 128
_SUBLANES = 8
# logits are one-hot (x in some bin) or all-zero (x <= 0): logsumexp is a constant.
_LSE_HOT = math.log(5.0 + math.e)
_LSE_NONE = math.log(6.0)


def _isodose_kernel(x_ref, t_ref, num_ref, hot_ref, *,
                    n_elems, block_rows, blocks_per_core, nblk):
    p = pl.program_id(0)   # megacore split axis ("parallel")
    i = pl.program_id(1)   # reduction axis ("arbitrary")

    # Resident per-core vreg-sized accumulators: init on first inner step.
    @pl.when(i == 0)
    def _init():
        num_ref[...] = jnp.zeros_like(num_ref)
        hot_ref[...] = jnp.zeros_like(hot_ref)

    blk = p * blocks_per_core + i            # logical row-block index (unclamped)

    def _body(mask_tail):
        x = x_ref[...]                       # (BR, 128) f32 predicted dose
        t = t_ref[...]                       # (BR, 128) f32 target dose

        x_hot = x > 0.0                      # x falls in *some* bin
        t_hot = t > _UPPER_EDGES[0]          # target class != 0  (weight 100)

        # idx_x == idx_t  <=>  for every edge e: (x > e) == (t > e)
        eq = (x > _UPPER_EDGES[0]) == t_hot
        for e in _UPPER_EDGES[1:]:
            eq = eq & ((x > e) == (t > e))

        logit_t = (eq & x_hot).astype(jnp.float32)          # x_cat[i, t_i]
        lse = jnp.where(x_hot, _LSE_HOT, _LSE_NONE)         # logsumexp of the logits
        w_pix = jnp.where(t_hot, 100.0, 1.0)                # class weight of target
        loss = w_pix * (lse - logit_t)
        hot = t_hot.astype(jnp.float32)                     # -> den = n + 99*sum(hot)

        if mask_tail:
            # Only the (possibly ragged / lane-padded) last block pays for the mask.
            row = lax.broadcasted_iota(jnp.int32, x.shape, 0)
            lane = lax.broadcasted_iota(jnp.int32, x.shape, 1)
            gidx = (blk * block_rows + row) * _LANES + lane
            valid = gidx < n_elems
            loss = jnp.where(valid, loss, 0.0)
            hot = jnp.where(valid, hot, 0.0)

        br = x.shape[0]
        # Pure VALU reduction over the non-tiled leading axis into one vreg.
        num_ref[...] += jnp.sum(loss.reshape(br // _SUBLANES, _SUBLANES, _LANES),
                                axis=0)[None]
        hot_ref[...] += jnp.sum(hot.reshape(br // _SUBLANES, _SUBLANES, _LANES),
                                axis=0)[None]

    @pl.when(blk < nblk - 1)      # full interior block: unmasked fast path
    def _fast():
        _body(False)

    @pl.when(blk == nblk - 1)     # last block: ragged / lane-padded tail masked
    def _tail():
        _body(True)
    # blk > nblk - 1 (clamped overflow block on the parallel axis): skip entirely.


@functools.partial(jax.jit, static_argnames=("block_rows",))
def isodose_loss(pred, target, block_rows=4096):
    x = pred.reshape(-1).astype(jnp.float32)
    t = target.reshape(-1).astype(jnp.float32)
    n = x.shape[0]

    # Pad only up to the next (8, 128) vreg multiple (<= 1023 elems); the padded
    # tail is masked in-kernel, so no mask stream and no tile-multiple padding.
    pad = (-n) % (_SUBLANES * _LANES)
    if pad:
        x = jnp.pad(x, (0, pad))
        t = jnp.pad(t, (0, pad))
    rows = (n + pad) // _LANES                    # multiple of 8
    x2 = x.reshape(rows, _LANES)
    t2 = t.reshape(rows, _LANES)

    # Large vreg-aligned row tiles; a small input becomes one full-array block.
    br = max(_SUBLANES, (block_rows // _SUBLANES) * _SUBLANES)
    br = br if rows >= br else rows
    nblk = -(-rows // br)                         # total row blocks
    # Only emit the 2-way megacore split when there is real work to split
    # (on single-TC chips / tiny inputs a duplicate block would be pure waste).
    ncores = 2 if nblk >= 2 else 1
    half = -(-nblk // ncores)                     # row blocks per TensorCore

    in_spec = pl.BlockSpec(
        (br, _LANES),
        # Clamp overflow block indices (odd nblk); their compute is skipped
        # in-kernel, so re-fetching a valid block is harmless.
        lambda p, i: (jnp.minimum(p * half + i, nblk - 1), 0))
    acc_spec = pl.BlockSpec((1, _SUBLANES, _LANES), lambda p, i: (p, 0, 0))

    kernel = functools.partial(_isodose_kernel, n_elems=n, block_rows=br,
                               blocks_per_core=half, nblk=nblk)

    # TODO(synk): verify on v7x (pl.lower_as_mlir / trace) that the leading
    # "parallel" axis shards across both TensorCores; if serialized, switch to
    # pltpu.CORE_PARALLEL.
    num, hot = pl.pallas_call(
        kernel,
        out_shape=(jax.ShapeDtypeStruct((ncores, _SUBLANES, _LANES), jnp.float32),
                   jax.ShapeDtypeStruct((ncores, _SUBLANES, _LANES), jnp.float32)),
        grid=(ncores, half),
        in_specs=[in_spec, in_spec],
        out_specs=(acc_spec, acc_spec),
        compiler_params=pltpu.CompilerParams(
            dimension_semantics=("parallel", "arbitrary")),
    )(x2, t2)

    # Tiny final reduction (2 * 8 * 128 partials per output) done in XLA.
    den = jnp.float32(n) + 99.0 * jnp.sum(hot)
    return jnp.sum(num) / den


def isodose_loss_ref(pred, target):
    """Pure-JAX reference mirroring the PyTorch forward exactly."""
    in_cat = jnp.stack(
        [((pred > lo) & (pred <= hi)).astype(jnp.float32) for lo, hi in _THRESHOLDS], axis=1)
    tg_cat = jnp.stack(
        [((target > lo) & (target <= hi)).astype(jnp.float32) for lo, hi in _THRESHOLDS], axis=1)
    tg_idx = jnp.argmax(tg_cat, axis=1)
    w = jnp.array(_WEIGHTS, jnp.float32)
    logp = jax.nn.log_softmax(in_cat, axis=1)
    logp_t = jnp.take_along_axis(logp, tg_idx[:, None, ...], axis=1).squeeze(1)
    w_pix = w[tg_idx]
    return jnp.sum(-w_pix * logp_t) / jnp.sum(w_pix)


if __name__ == "__main__":
    key = jax.random.PRNGKey(0)
    k1, k2, k3, k4, k5, k6 = jax.random.split(key, 6)

    # Case 1: vreg-aligned dose volume (batch=2, 32x32), doses in [0, 90] Gy.
    pred1 = jax.random.uniform(k1, (2, 32, 32), minval=0.0, maxval=90.0, dtype=jnp.float32)
    targ1 = jax.random.uniform(k2, (2, 32, 32), minval=0.0, maxval=90.0, dtype=jnp.float32)
    out1 = jax.block_until_ready(isodose_loss(pred1, targ1))
    ref1 = jax.block_until_ready(isodose_loss_ref(pred1, targ1))
    np.testing.assert_allclose(np.asarray(out1), np.asarray(ref1), rtol=1e-5, atol=1e-5)

    # Case 2: ragged size + some out-of-bin (<= 0) doses — exercises tail masking.
    pred2 = jax.random.uniform(k3, (3, 17, 29), minval=-5.0, maxval=90.0, dtype=jnp.float32)
    targ2 = jax.random.uniform(k4, (3, 17, 29), minval=-5.0, maxval=90.0, dtype=jnp.float32)
    out2 = jax.block_until_ready(isodose_loss(pred2, targ2))
    ref2 = jax.block_until_ready(isodose_loss_ref(pred2, targ2))
    np.testing.assert_allclose(np.asarray(out2), np.asarray(ref2), rtol=1e-5, atol=1e-5)

    # Case 3: multi-block grid with fast interior blocks, a ragged last block, and
    # a skipped overflow block on the parallel axis (small block_rows override
    # just to exercise the pipeline; default stays 4096).
    pred3 = jax.random.uniform(k5, (2, 20, 128), minval=0.0, maxval=90.0, dtype=jnp.float32)
    targ3 = jax.random.uniform(k6, (2, 20, 128), minval=0.0, maxval=90.0, dtype=jnp.float32)
    out3 = jax.block_until_ready(isodose_loss(pred3, targ3, block_rows=16))
    ref3 = jax.block_until_ready(isodose_loss_ref(pred3, targ3))
    np.testing.assert_allclose(np.asarray(out3), np.asarray(ref3), rtol=1e-5, atol=1e-5)

    print("KERNEL_OK")
</pallas_src>

<mosaic_0001>
module attributes {stable_mosaic.version = 11 : i64} {
  func.func @_isodose_kernel(%arg0: i32, %arg1: i32, %arg2: memref<16x128xf32, #tpu.memory_space<vmem>>, %arg3: memref<16x128xf32, #tpu.memory_space<vmem>>, %arg4: memref<1x8x128xf32, #tpu.memory_space<vmem>>, %arg5: memref<1x8x128xf32, #tpu.memory_space<vmem>>) attributes {dimension_semantics = [#tpu.dimension_semantics<parallel>, #tpu.dimension_semantics<arbitrary>], iteration_bounds = array<i64: 1, 1>, scalar_prefetch = 0 : i64, scratch_operands = 0 : i64, tpu.core_type = #tpu.core_type<tc>, window_params = [{transform_indices = @transform_0, window_bounds = array<i64: 16, 128>}, {transform_indices = @transform_1, window_bounds = array<i64: 16, 128>}, {transform_indices = @transform_2, window_bounds = array<i64: 1, 8, 128>}, {transform_indices = @transform_3, window_bounds = array<i64: 1, 8, 128>}]} {
    %c0_i32 = arith.constant 0 : i32
    %0 = arith.cmpi eq, %arg1, %c0_i32 : i32
    %1 = arith.extui %0 : i1 to i32
    %c0_i32_0 = arith.constant 0 : i32
    %2 = arith.cmpi ne, %1, %c0_i32_0 : i32
    scf.if %2 {
      %cst = arith.constant 0.000000e+00 : f32
      %11 = vector.broadcast %cst : f32 to vector<1x8x128xf32>
      %c0 = arith.constant 0 : index
      %c0_5 = arith.constant 0 : index
      %c0_6 = arith.constant 0 : index
      %12 = vector.load %arg4[%c0, %c0_5, %c0_6] : memref<1x8x128xf32, #tpu.memory_space<vmem>>, vector<1x8x128xf32>
      tpu.vector_store %arg4[%c0, %c0_5, %c0_6], %11 {strides = array<i32>} : memref<1x8x128xf32, #tpu.memory_space<vmem>>, vector<1x8x128xf32>,
      %cst_7 = arith.constant 0.000000e+00 : f32
      %13 = vector.broadcast %cst_7 : f32 to vector<1x8x128xf32>
      %c0_8 = arith.constant 0 : index
      %c0_9 = arith.constant 0 : index
      %c0_10 = arith.constant 0 : index
      %14 = vector.load %arg5[%c0_8, %c0_9, %c0_10] : memref<1x8x128xf32, #tpu.memory_space<vmem>>, vector<1x8x128xf32>
      tpu.vector_store %arg5[%c0_8, %c0_9, %c0_10], %13 {strides = array<i32>} : memref<1x8x128xf32, #tpu.memory_space<vmem>>, vector<1x8x128xf32>,
    } else {
    }
    %c1_i32 = arith.constant 1 : i32
    %3 = arith.muli %arg0, %c1_i32 : i32
    %4 = arith.addi %3, %arg1 : i32
    %c0_i32_1 = arith.constant 0 : i32
    %5 = arith.cmpi slt, %4, %c0_i32_1 : i32
    %6 = arith.extui %5 : i1 to i32
    %c0_i32_2 = arith.constant 0 : i32
    %7 = arith.cmpi ne, %6, %c0_i32_2 : i32
    scf.if %7 {
      %c0 = arith.constant 0 : index
      %c0_5 = arith.constant 0 : index
      %11 = vector.load %arg2[%c0, %c0_5] : memref<16x128xf32, #tpu.memory_space<vmem>>, vector<16x128xf32>
      %c0_6 = arith.constant 0 : index
      %c0_7 = arith.constant 0 : index
      %12 = vector.load %arg3[%c0_6, %c0_7] : memref<16x128xf32, #tpu.memory_space<vmem>>, vector<16x128xf32>
      %cst = arith.constant 0.000000e+00 : f32
      %13 = vector.broadcast %cst : f32 to vector<16x128xf32>
      %14 = arith.cmpf ogt, %11, %13 : vector<16x128xf32>
      %cst_8 = arith.constant 2.000000e+01 : f32
      %15 = vector.broadcast %cst_8 : f32 to vector<16x128xf32>
      %16 = arith.cmpf ogt, %12, %15 : vector<16x128xf32>
      %cst_9 = arith.constant 2.000000e+01 : f32
      %17 = vector.broadcast %cst_9 : f32 to vector<16x128xf32>
      %18 = arith.cmpf ogt, %11, %17 : vector<16x128xf32>
      %19 = arith.xori %18, %16 : vector<16x128xi1>
      %cst_10 = arith.constant dense<true> : vector<16x128xi1>
      %20 = arith.xori %19, %cst_10 : vector<16x128xi1>
      %cst_11 = arith.constant 4.000000e+01 : f32
      %21 = vector.broadcast %cst_11 : f32 to vector<16x128xf32>
      %22 = arith.cmpf ogt, %11, %21 : vector<16x128xf32>
      %cst_12 = arith.constant 4.000000e+01 : f32
      %23 = vector.broadcast %cst_12 : f32 to vector<16x128xf32>
      %24 = arith.cmpf ogt, %12, %23 : vector<16x128xf32>
      %25 = arith.xori %22, %24 : vector<16x128xi1>
      %cst_13 = arith.constant dense<true> : vector<16x128xi1>
      %26 = arith.xori %25, %cst_13 : vector<16x128xi1>
      %27 = arith.andi %20, %26 : vector<16x128xi1>
      %cst_14 = arith.constant 5.500000e+01 : f32
      %28 = vector.broadcast %cst_14 : f32 to vector<16x128xf32>
      %29 = arith.cmpf ogt, %11, %28 : vector<16x128xf32>
      %cst_15 = arith.constant 5.500000e+01 : f32
      %30 = vector.broadcast %cst_15 : f32 to vector<16x128xf32>
      %31 = arith.cmpf ogt, %12, %30 : vector<16x128xf32>
      %32 = arith.xori %29, %31 : vector<16x128xi1>
      %cst_16 = arith.constant dense<true> : vector<16x128xi1>
      %33 = arith.xori %32, %cst_16 : vector<16x128xi1>
      %34 = arith.andi %27, %33 : vector<16x128xi1>
      %cst_17 = arith.constant 6.500000e+01 : f32
      %35 = vector.broadcast %cst_17 : f32 to vector<16x128xf32>
      %36 = arith.cmpf ogt, %11, %35 : vector<16x128xf32>
      %cst_18 = arith.constant 6.500000e+01 : f32
      %37 = vector.broadcast %cst_18 : f32 to vector<16x128xf32>
      %38 = arith.cmpf ogt, %12, %37 : vector<16x128xf32>
      %39 = arith.xori %36, %38 : vector<16x128xi1>
      %cst_19 = arith.constant dense<true> : vector<16x128xi1>
      %40 = arith.xori %39, %cst_19 : vector<16x128xi1>
      %41 = arith.andi %34, %40 : vector<16x128xi1>
      %cst_20 = arith.constant 7.500000e+01 : f32
      %42 = vector.broadcast %cst_20 : f32 to vector<16x128xf32>
      %43 = arith.cmpf ogt, %11, %42 : vector<16x128xf32>
      %cst_21 = arith.constant 7.500000e+01 : f32
      %44 = vector.broadcast %cst_21 : f32 to vector<16x128xf32>
      %45 = arith.cmpf ogt, %12, %44 : vector<16x128xf32>
      %46 = arith.xori %43, %45 : vector<16x128xi1>
      %cst_22 = arith.constant dense<true> : vector<16x128xi1>
      %47 = arith.xori %46, %cst_22 : vector<16x128xi1>
      %48 = arith.andi %41, %47 : vector<16x128xi1>
      %49 = arith.andi %48, %14 : vector<16x128xi1>
      %50 = arith.extui %49 : vector<16x128xi1> to vector<16x128xi32>
      %51 = arith.sitofp %50 : vector<16x128xi32> to vector<16x128xf32>
      %cst_23 = arith.constant 2.04359174 : f32
      %cst_24 = arith.constant 1.79175949 : f32
      %52 = vector.broadcast %cst_23 : f32 to vector<16x128xf32>
      %53 = vector.broadcast %cst_24 : f32 to vector<16x128xf32>
      %54 = arith.select %14, %52, %53 : vector<16x128xi1>, vector<16x128xf32>
      %cst_25 = arith.constant 1.000000e+02 : f32
      %cst_26 = arith.constant 1.000000e+00 : f32
      %55 = vector.broadcast %cst_25 : f32 to vector<16x128xf32>
      %56 = vector.broadcast %cst_26 : f32 to vector<16x128xf32>
      %57 = arith.select %16, %55, %56 : vector<16x128xi1>, vector<16x128xf32>
      %58 = arith.subf %54, %51 : vector<16x128xf32>
      %59 = arith.mulf %57, %58 : vector<16x128xf32>
      %60 = arith.extui %16 : vector<16x128xi1> to vector<16x128xi32>
      %61 = arith.sitofp %60 : vector<16x128xi32> to vector<16x128xf32>
      %c0_27 = arith.constant 0 : index
      %c0_28 = arith.constant 0 : index
      %c0_29 = arith.constant 0 : index
      %62 = vector.load %arg4[%c0_27, %c0_28, %c0_29] : memref<1x8x128xf32, #tpu.memory_space<vmem>>, vector<1x8x128xf32>
      %63 = vector.shape_cast %59 : vector<16x128xf32> to vector<2x8x128xf32>
      %cst_30 = arith.constant dense<0.000000e+00> : vector<8x128xf32>
      %64 = vector.multi_reduction <add>, %63, %cst_30 [0] : vector<2x8x128xf32> to vector<8x128xf32>
      %65 = vector.shape_cast %64 : vector<8x128xf32> to vector<1x8x128xf32>
      %66 = arith.addf %62, %65 : vector<1x8x128xf32>
      %c0_31 = arith.constant 0 : index
      %c0_32 = arith.constant 0 : index
      %c0_33 = arith.constant 0 : index
      %67 = vector.load %arg4[%c0_31, %c0_32, %c0_33] : memref<1x8x128xf32, #tpu.memory_space<vmem>>, vector<1x8x128xf32>
      tpu.vector_store %arg4[%c0_31, %c0_32, %c0_33], %66 {strides = array<i32>} : memref<1x8x128xf32, #tpu.memory_space<vmem>>, vector<1x8x128xf32>,
      %c0_34 = arith.constant 0 : index
      %c0_35 = arith.constant 0 : index
      %c0_36 = arith.constant 0 : index
      %68 = vector.load %arg5[%c0_34, %c0_35, %c0_36] : memref<1x8x128xf32, #tpu.memory_space<vmem>>, vector<1x8x128xf32>
      %69 = vector.shape_cast %61 : vector<16x128xf32> to vector<2x8x128xf32>
      %cst_37 = arith.constant dense<0.000000e+00> : vector<8x128xf32>
      %70 = vector.multi_reduction <add>, %69, %cst_37 [0] : vector<2x8x128xf32> to vector<8x128xf32>
      %71 = vector.shape_cast %70 : vector<8x128xf32> to vector<1x8x128xf32>
      %72 = arith.addf %68, %71 : vector<1x8x128xf32>
      %c0_38 = arith.constant 0 : index
      %c0_39 = arith.constant 0 : index
      %c0_40 = arith.constant 0 : index
      %73 = vector.load %arg5[%c0_38, %c0_39, %c0_40] : memref<1x8x128xf32, #tpu.memory_space<vmem>>, vector<1x8x128xf32>
      tpu.vector_store %arg5[%c0_38, %c0_39, %c0_40], %72 {strides = array<i32>} : memref<1x8x128xf32, #tpu.memory_space<vmem>>, vector<1x8x128xf32>,
    } else {
    }
    %c0_i32_3 = arith.constant 0 : i32
    %8 = arith.cmpi eq, %4, %c0_i32_3 : i32
    %9 = arith.extui %8 : i1 to i32
    %c0_i32_4 = arith.constant 0 : i32
    %10 = arith.cmpi ne, %9, %c0_i32_4 : i32
    scf.if %10 {
      %c0 = arith.constant 0 : index
      %c0_5 = arith.constant 0 : index
      %11 = vector.load %arg2[%c0, %c0_5] : memref<16x128xf32, #tpu.memory_space<vmem>>, vector<16x128xf32>
      %c0_6 = arith.constant 0 : index
      %c0_7 = arith.constant 0 : index
      %12 = vector.load %arg3[%c0_6, %c0_7] : memref<16x128xf32, #tpu.memory_space<vmem>>, vector<16x128xf32>
      %cst = arith.constant 0.000000e+00 : f32
      %13 = vector.broadcast %cst : f32 to vector<16x128xf32>
      %14 = arith.cmpf ogt, %11, %13 : vector<16x128xf32>
      %cst_8 = arith.constant 2.000000e+01 : f32
      %15 = vector.broadcast %cst_8 : f32 to vector<16x128xf32>
      %16 = arith.cmpf ogt, %12, %15 : vector<16x128xf32>
      %cst_9 = arith.constant 2.000000e+01 : f32
      %17 = vector.broadcast %cst_9 : f32 to vector<16x128xf32>
      %18 = arith.cmpf ogt, %11, %17 : vector<16x128xf32>
      %19 = arith.xori %18, %16 : vector<16x128xi1>
      %cst_10 = arith.constant dense<true> : vector<16x128xi1>
      %20 = arith.xori %19, %cst_10 : vector<16x128xi1>
      %cst_11 = arith.constant 4.000000e+01 : f32
      %21 = vector.broadcast %cst_11 : f32 to vector<16x128xf32>
      %22 = arith.cmpf ogt, %11, %21 : vector<16x128xf32>
      %cst_12 = arith.constant 4.000000e+01 : f32
      %23 = vector.broadcast %cst_12 : f32 to vector<16x128xf32>
      %24 = arith.cmpf ogt, %12, %23 : vector<16x128xf32>
      %25 = arith.xori %22, %24 : vector<16x128xi1>
      %cst_13 = arith.constant dense<true> : vector<16x128xi1>
      %26 = arith.xori %25, %cst_13 : vector<16x128xi1>
      %27 = arith.andi %20, %26 : vector<16x128xi1>
      %cst_14 = arith.constant 5.500000e+01 : f32
      %28 = vector.broadcast %cst_14 : f32 to vector<16x128xf32>
      %29 = arith.cmpf ogt, %11, %28 : vector<16x128xf32>
      %cst_15 = arith.constant 5.500000e+01 : f32
      %30 = vector.broadcast %cst_15 : f32 to vector<16x128xf32>
      %31 = arith.cmpf ogt, %12, %30 : vector<16x128xf32>
      %32 = arith.xori %29, %31 : vector<16x128xi1>
      %cst_16 = arith.constant dense<true> : vector<16x128xi1>
      %33 = arith.xori %32, %cst_16 : vector<16x128xi1>
      %34 = arith.andi %27, %33 : vector<16x128xi1>
      %cst_17 = arith.constant 6.500000e+01 : f32
      %35 = vector.broadcast %cst_17 : f32 to vector<16x128xf32>
      %36 = arith.cmpf ogt, %11, %35 : vector<16x128xf32>
      %cst_18 = arith.constant 6.500000e+01 : f32
      %37 = vector.broadcast %cst_18 : f32 to vector<16x128xf32>
      %38 = arith.cmpf ogt, %12, %37 : vector<16x128xf32>
      %39 = arith.xori %36, %38 : vector<16x128xi1>
      %cst_19 = arith.constant dense<true> : vector<16x128xi1>
      %40 = arith.xori %39, %cst_19 : vector<16x128xi1>
      %41 = arith.andi %34, %40 : vector<16x128xi1>
      %cst_20 = arith.constant 7.500000e+01 : f32
      %42 = vector.broadcast %cst_20 : f32 to vector<16x128xf32>
      %43 = arith.cmpf ogt, %11, %42 : vector<16x128xf32>
      %cst_21 = arith.constant 7.500000e+01 : f32
      %44 = vector.broadcast %cst_21 : f32 to vector<16x128xf32>
      %45 = arith.cmpf ogt, %12, %44 : vector<16x128xf32>
      %46 = arith.xori %43, %45 : vector<16x128xi1>
      %cst_22 = arith.constant dense<true> : vector<16x128xi1>
      %47 = arith.xori %46, %cst_22 : vector<16x128xi1>
      %48 = arith.andi %41, %47 : vector<16x128xi1>
      %49 = arith.andi %48, %14 : vector<16x128xi1>
      %50 = arith.extui %49 : vector<16x128xi1> to vector<16x128xi32>
      %51 = arith.sitofp %50 : vector<16x128xi32> to vector<16x128xf32>
      %cst_23 = arith.constant 2.04359174 : f32
      %cst_24 = arith.constant 1.79175949 : f32
      %52 = vector.broadcast %cst_23 : f32 to vector<16x128xf32>
      %53 = vector.broadcast %cst_24 : f32 to vector<16x128xf32>
      %54 = arith.select %14, %52, %53 : vector<16x128xi1>, vector<16x128xf32>
      %cst_25 = arith.constant 1.000000e+02 : f32
      %cst_26 = arith.constant 1.000000e+00 : f32
      %55 = vector.broadcast %cst_25 : f32 to vector<16x128xf32>
      %56 = vector.broadcast %cst_26 : f32 to vector<16x128xf32>
      %57 = arith.select %16, %55, %56 : vector<16x128xi1>, vector<16x128xf32>
      %58 = arith.subf %54, %51 : vector<16x128xf32>
      %59 = arith.mulf %57, %58 : vector<16x128xf32>
      %60 = arith.extui %16 : vector<16x128xi1> to vector<16x128xi32>
      %61 = arith.sitofp %60 : vector<16x128xi32> to vector<16x128xf32>
      %62 = tpu.iota {dimensions = array<i32: 0>} : vector<16x128xi32>
      %63 = tpu.iota {dimensions = array<i32: 1>} : vector<16x128xi32>
      %c16_i32 = arith.constant 16 : i32
      %64 = arith.muli %4, %c16_i32 : i32
      %65 = vector.broadcast %64 : i32 to vector<16x128xi32>
      %66 = arith.addi %65, %62 : vector<16x128xi32>
      %c128_i32 = arith.constant 128 : i32
      %67 = vector.broadcast %c128_i32 : i32 to vector<16x128xi32>
      %68 = arith.muli %66, %67 : vector<16x128xi32>
      %69 = arith.addi %68, %63 : vector<16x128xi32>
      %c2048_i32 = arith.constant 2048 : i32
      %70 = vector.broadcast %c2048_i32 : i32 to vector<16x128xi32>
      %71 = arith.cmpi slt, %69, %70 : vector<16x128xi32>
      %cst_27 = arith.constant 0.000000e+00 : f32
      %72 = vector.broadcast %cst_27 : f32 to vector<16x128xf32>
      %73 = arith.select %71, %59, %72 : vector<16x128xi1>, vector<16x128xf32>
      %cst_28 = arith.constant 0.000000e+00 : f32
      %74 = vector.broadcast %cst_28 : f32 to vector<16x128xf32>
      %75 = arith.select %71, %61, %74 : vector<16x128xi1>, vector<16x128xf32>
      %c0_29 = arith.constant 0 : index
      %c0_30 = arith.constant 0 : index
      %c0_31 = arith.constant 0 : index
      %76 = vector.load %arg4[%c0_29, %c0_30, %c0_31] : memref<1x8x128xf32, #tpu.memory_space<vmem>>, vector<1x8x128xf32>
      %77 = vector.shape_cast %73 : vector<16x128xf32> to vector<2x8x128xf32>
      %cst_32 = arith.constant dense<0.000000e+00> : vector<8x128xf32>
      %78 = vector.multi_reduction <add>, %77, %cst_32 [0] : vector<2x8x128xf32> to vector<8x128xf32>
      %79 = vector.shape_cast %78 : vector<8x128xf32> to vector<1x8x128xf32>
      %80 = arith.addf %76, %79 : vector<1x8x128xf32>
      %c0_33 = arith.constant 0 : index
      %c0_34 = arith.constant 0 : index
      %c0_35 = arith.constant 0 : index
      %81 = vector.load %arg4[%c0_33, %c0_34, %c0_35] : memref<1x8x128xf32, #tpu.memory_space<vmem>>, vector<1x8x128xf32>
      tpu.vector_store %arg4[%c0_33, %c0_34, %c0_35], %80 {strides = array<i32>} : memref<1x8x128xf32, #tpu.memory_space<vmem>>, vector<1x8x128xf32>,
      %c0_36 = arith.constant 0 : index
      %c0_37 = arith.constant 0 : index
      %c0_38 = arith.constant 0 : index
      %82 = vector.load %arg5[%c0_36, %c0_37, %c0_38] : memref<1x8x128xf32, #tpu.memory_space<vmem>>, vector<1x8x128xf32>
      %83 = vector.shape_cast %75 : vector<16x128xf32> to vector<2x8x128xf32>
      %cst_39 = arith.constant dense<0.000000e+00> : vector<8x128xf32>
      %84 = vector.multi_reduction <add>, %83, %cst_39 [0] : vector<2x8x128xf32> to vector<8x128xf32>
      %85 = vector.shape_cast %84 : vector<8x128xf32> to vector<1x8x128xf32>
      %86 = arith.addf %82, %85 : vector<1x8x128xf32>
      %c0_40 = arith.constant 0 : index
      %c0_41 = arith.constant 0 : index
      %c0_42 = arith.constant 0 : index
      %87 = vector.load %arg5[%c0_40, %c0_41, %c0_42] : memref<1x8x128xf32, #tpu.memory_space<vmem>>, vector<1x8x128xf32>
      tpu.vector_store %arg5[%c0_40, %c0_41, %c0_42], %86 {strides = array<i32>} : memref<1x8x128xf32, #tpu.memory_space<vmem>>, vector<1x8x128xf32>,
    } else {
    }
    return
  }
  func.func @transform_0(%arg0: i32, %arg1: i32) -> (i32, i32) {
    %c1_i32 = arith.constant 1 : i32
    %0 = arith.muli %arg0, %c1_i32 : i32
    %1 = arith.addi %0, %arg1 : i32
    %c0_i32 = arith.constant 0 : i32
    %2 = arith.minsi %1, %c0_i32 : i32
    %c0_i32_0 = arith.constant 0 : i32
    %c0_i32_1 = arith.constant 0 : i32
    return %2, %c0_i32_0 : i32, i32
  }
  func.func @transform_1(%arg0: i32, %arg1: i32) -> (i32, i32) {
    %c1_i32 = arith.constant 1 : i32
    %0 = arith.muli %arg0, %c1_i32 : i32
    %1 = arith.addi %0, %arg1 : i32
    %c0_i32 = arith.constant 0 : i32
    %2 = arith.minsi %1, %c0_i32 : i32
    %c0_i32_0 = arith.constant 0 : i32
    %c0_i32_1 = arith.constant 0 : i32
    return %2, %c0_i32_0 : i32, i32
  }
  func.func @transform_2(%arg0: i32, %arg1: i32) -> (i32, i32, i32) {
    %c0_i32 = arith.constant 0 : i32
    %c0_i32_0 = arith.constant 0 : i32
    %c0_i32_1 = arith.constant 0 : i32
    return %arg0, %c0_i32, %c0_i32_0 : i32, i32, i32
  }
  func.func @transform_3(%arg0: i32, %arg1: i32) -> (i32, i32, i32) {
    %c0_i32 = arith.constant 0 : i32
    %c0_i32_0 = arith.constant 0 : i32
    %c0_i32_1 = arith.constant 0 : i32
    return %arg0, %c0_i32, %c0_i32_0 : i32, i32, i32
  }
}

</mosaic_0001>

<bundles_post_ra>
// kernel: isodose_loss.1
= control target key start
LH: loop header
LB: loop body
LE: loop exit
PB: predicated region body
PF: predicated region fallthrough
CT: control target
= control target key end

     0   :  { %v244_v4 = vlaneseq  ;;  %vm303_vm8 = vmmov 1   ;;  %v472_v6 = vmov 0  ;;  %v474_v9 = vmov 0  ;;  %s459_s0 = inlined_call_operand.vmem [shape: f32[16,128], index: 0, kind: input, shape index: {}]   ;;  %s460_s1 = inlined_call_operand.vmem [shape: f32[16,128], index: 1, kind: input, shape index: {}]   ;;  %s461_s3 = inlined_call_operand.vmem [shape: f32[1,8,128], index: 3, kind: output, shape index: {1}]   ;;  %s462_s2 = inlined_call_operand.vmem [shape: f32[1,8,128], index: 2, kind: output, shape index: {0}]  }
   0x1   :  { %v330_v0 = vld [vmem:[%s459_s0] sm:$0xff]  ;;  %v335_v1 = vld [vmem:[%s459_s0 + $0x8] sm:$0xff]  ;;  %v476_v10 = vmov 0  ;;  %v304_v15 = vmov 0.0   ;;  %v305_v26 = vmov 1.7917595  }
   0x2   :  { %v340_v2 = vld [vmem:[%s460_s1] sm:$0xff]  ;;  %v345_v3 = vld [vmem:[%s460_s1 + $0x8] sm:$0xff]  ;;  %vm180_vm1 = vcmp.gt.f32.partialorder %v330_v0, 20.0  ;;  %vm181_vm3 = vcmp.gt.f32.partialorder %v335_v1, 20.0  ;;  %vm186_vm6 = vcmp.gt.f32.partialorder %v330_v0, 40.0  ;;  %vm187_vm10 = vcmp.gt.f32.partialorder %v335_v1, 40.0 }
   0x3   :  { %vm468_vm0 = vcmp.gt.f32.partialorder %v340_v2, 20.0  ;;  %vm467_vm2 = vcmp.gt.f32.partialorder %v345_v3, 20.0  ;;  %vm188_vm7 = vcmp.gt.f32.partialorder %v340_v2, 40.0  ;;  %vm189_vm11 = vcmp.gt.f32.partialorder %v345_v3, 40.0 }
   0x4   :  { %vm182_vm4 = vmxor %vm180_vm1, %vm468_vm0  ;;  %v245_v7 = vshrl.u32 %v244_v4, 7  ;;  %v248_v8 = vand.u32 127, %v244_v4  ;;  %v297_v16 = vsel %vm468_vm0, 1.0, %v304_v15  ;;  %v298_v18 = vsel %vm467_vm2, 1.0, %v304_v15 }
   0x5   :  { %vm183_vm5 = vmxor %vm181_vm3, %vm467_vm2  ;;  %vm196_vm3 = vcmp.gt.f32.partialorder %v330_v0, 55.0  ;;  %v306_v30 = vmov 1.0  }
   0x6   :  { %vm358_vm9 = vmxor %vm182_vm4, %vm303_vm8  ;;  %vm198_vm4 = vcmp.gt.f32.partialorder %v340_v2, 55.0  ;;  %v246_v11 = vadd.s32 8, %v245_v7  ;;  %v253_v12 = vmul.u32 128, %v245_v7 }
   0x7   :  { %vm365_vm12 = vmxor %vm183_vm5, %vm303_vm8 }
   0x8   :  { %v473_v6 = vsel %vm365_vm12, 4294967295, %v472_v6  ;;  %vm190_vm13 = vmxor %vm186_vm6, %vm188_vm7  ;;  %vm197_vm6 = vcmp.gt.f32.partialorder %v335_v1, 55.0  ;;  %vm199_vm7 = vcmp.gt.f32.partialorder %v345_v3, 55.0  ;;  %v254_v13 = vmul.u32 128, %v246_v11 }
   0x9   :  { %vm191_vm14 = vmxor %vm187_vm10, %vm189_vm11  ;;  %v255_v14 = vadd.s32 %v253_v12, %v248_v8  ;;  %vm206_vm10 = vcmp.gt.f32.partialorder %v330_v0, 65.0 }
   0xa   :  { %vm370_vm15 = vmxor %vm190_vm13, %vm303_vm8  ;;  %v256_v17 = vadd.s32 %v254_v13, %v248_v8 }
   0xb   :  { %v475_v9 = vsel %vm370_vm15, 4294967295, %v474_v9  ;;  %vm375_vm1 = vmxor %vm191_vm14, %vm303_vm8  ;;  %vm466_vm14 = vcmp.lt.s32.totalorder %v255_v14, 2048 }
   0xc   :  { %v477_v10 = vsel %vm375_vm1, 4294967295, %v476_v10  ;;  %vm200_vm11 = vmxor %vm196_vm3, %vm198_vm4  ;;  %v261_v19 = vsel %vm466_vm14, %v297_v16, 0.0  ;;  %vm208_vm1 = vcmp.gt.f32.partialorder %v340_v2, 65.0  ;;  %vm469_vm12 = vcmp.lt.s32.totalorder %v256_v17, 2048 }
   0xd   :  { %vm201_vm13 = vmxor %vm197_vm6, %vm199_vm7  ;;  %vm478_vm3 = vnez %v475_v9  ;;  %vm207_vm7 = vcmp.gt.f32.partialorder %v335_v1, 65.0  ;;  %v262_v21 = vsel %vm469_vm12, %v298_v18, 0.0  ;;  %vm483_vm14 = vnez %v477_v10 }
   0xe   :  { %vm202_vm5 = vmxor %vm200_vm11, %vm303_vm8  ;;  %vm209_vm11 = vcmp.gt.f32.partialorder %v345_v3, 65.0  ;;  %v268_v23 = vadd.f32 %v262_v21, %v261_v19  ;;  %vm216_vm12 = vcmp.gt.f32.partialorder %v330_v0, 75.0 }
   0xf   :  { %vm203_vm15 = vmxor %vm201_vm13, %vm303_vm8  ;;  %vm482_vm13 = vnez %v473_v6 }
  0x10   :  { %vm479_vm4 = vmand %vm358_vm9, %vm478_vm3  ;;  %270 = vst [vmem:[%s461_s3] sm:$0xff] %v268_v23 }
  0x11   :  { %vm405_vm6 = vmand %vm479_vm4, %vm202_vm5 }
  0x12   :  { %vm484_vm2 = vmand %vm482_vm13, %vm483_vm14  ;;  %vm176_vm13 = vcmp.gt.f32.partialorder %v330_v0, 0.0 }
  0x13   :  { %vm417_vm0 = vmand %vm484_vm2, %vm203_vm15  ;;  %vm218_vm2 = vcmp.gt.f32.partialorder %v340_v2, 75.0  ;;  %v232_v27 = vsel %vm176_vm13, 2.0435917, %v305_v26 }
  0x14   :  { %vm210_vm9 = vmxor %vm206_vm10, %vm208_vm1  ;;  %vm217_vm1 = vcmp.gt.f32.partialorder %v335_v1, 75.0  ;;  %vm219_vm10 = vcmp.gt.f32.partialorder %v345_v3, 75.0 }
  0x15   :  { %vm211_vm5 = vmxor %vm207_vm7, %vm209_vm11 }
  0x16   :  { %vm422_vm3 = vmxor %vm210_vm9, %vm303_vm8 }
  0x17   :  { %vm427_vm4 = vmxor %vm211_vm5, %vm303_vm8  ;;  %vm177_vm5 = vcmp.gt.f32.partialorder %v335_v1, 0.0 }
  0x18   :  { %vm214_vm15 = vmand %vm405_vm6, %vm422_vm3  ;;  %v233_v28 = vsel %vm177_vm5, 2.0435917, %v305_v26 }
  0x19   :  { %vm215_vm14 = vmand %vm417_vm0, %vm427_vm4 }
  0x1a   :  { %vm220_vm7 = vmxor %vm216_vm12, %vm218_vm2  ;;  %vm491_vm12 = vcmp.gt.f32.partialorder %v340_v2, 20.0 }
  0x1b   :  { %vm221_vm11 = vmxor %vm217_vm1, %vm219_vm10  ;;  %v234_v31 = vsel %vm491_vm12, 100.0, %v306_v30  ;;  %vm492_vm1 = vcmp.gt.f32.partialorder %v345_v3, 20.0 }
  0x1c   :  { %vm222_vm9 = vmxor %vm220_vm7, %vm303_vm8  ;;  %v235_v33 = vsel %vm492_vm1, 100.0, %v306_v30 }
  0x1d   :  { %vm223_vm3 = vmxor %vm221_vm11, %vm303_vm8  ;;  %vm493_vm8 = vcmp.lt.s32.totalorder %v255_v14, 2048 }
  0x1e   :  { %vm224_vm6 = vmand %vm214_vm15, %vm222_vm9  ;;  %vm494_vm15 = vcmp.lt.s32.totalorder %v256_v17, 2048 }
  0x1f   :  { %vm225_vm0 = vmand %vm215_vm14, %vm223_vm3 }
  0x20   :  { %vm226_vm4 = vmand %vm224_vm6, %vm176_vm13 }
  0x21   :  { %vm227_vm2 = vmand %vm225_vm0, %vm177_vm5  ;;  %v295_v29 = vsel %vm226_vm4, 1.0, %v304_v15 }
  0x22   :  { %v296_v32 = vsel %vm227_vm2, 1.0, %v304_v15  ;;  %v236_v34 = vsub.f32 %v232_v27, %v295_v29 }
  0x23   :  { %v237_v35 = vsub.f32 %v233_v28, %v296_v32 }
  0x24   :  { %v238_v36 = vmul.f32 %v236_v34, %v234_v31 }
  0x25   :  { %v239_v37 = vmul.f32 %v237_v35, %v235_v33 }
  0x26   :  { %v259_v38 = vsel %vm493_vm8, %v238_v36, 0.0 }
  0x27   :  { %v260_v39 = vsel %vm494_vm15, %v239_v37, 0.0 }
  0x28   :  { %v264_v40 = vadd.f32 %v260_v39, %v259_v38 }
  0x2a   :  { %266 = vst [vmem:[%s462_s2] sm:$0xff] %v264_v40 }

</bundles_post_ra>
